<compile_context>
chip_gen: v5e
topology: v5e:2x2
jax: 0.10.0
libtpu: 0.0.40
codegen_flags: <defaults>
</compile_context>

<pallas_src>
import numpy as np  # host-side (trace-time) index construction only
import jax
import jax.numpy as jnp
from jax.experimental import pallas as pl
from jax.experimental.pallas import tpu as pltpu

SLAB = 128          # lanes per pool-window slab (72 used, 56 zero-padded)
N_SLABS = 4         # 2x2 pool-window positions
C1_COLS = N_SLABS * SLAB   # 512


# ----------------------------------------------------------------------------
# Kernel
# ----------------------------------------------------------------------------
def digits_convnet_kernel(x_ref, w1_ref, b1_ref, w2_ref, b2_ref, wf_ref, bf_ref,
                          out_ref):
    x = x_ref[...]                                        # (T, 64) batch-major

    # conv1 (1->8 ch, 3x3, VALID) as ONE MXU matmul with the expanded (64, 512)
    # weight matrix; columns ordered (window_pos slab of 128, channel, pooled_pos).
    h1 = jnp.dot(x, w1_ref[...], preferred_element_type=jnp.float32) + b1_ref[...]
    h1 = jnp.maximum(h1, 0.0)                             # ReLU, (T, 512)

    # maxpool 2x2 stride 2: the four window positions are the four 128-lane
    # slabs, so pooling is 3 dense VPU maxima over vreg-aligned lane groups.
    pooled = jnp.maximum(jnp.maximum(h1[:, 0:128], h1[:, 128:256]),
                         jnp.maximum(h1[:, 256:384], h1[:, 384:512]))  # (T, 128)
    # (post-pool ReLU dropped: max of ReLU outputs is already non-negative)

    # conv2 (8->4 ch, 3x3 over the 3x3 map) == one matmul; zero rows in w2
    # annihilate the 56 padded lanes of each slab.
    h2 = jnp.dot(pooled, w2_ref[...], preferred_element_type=jnp.float32) + b2_ref[...]
    h2 = jnp.maximum(h2, 0.0)                             # ReLU, (T, 4)

    # fully-connected 4 -> 10.
    out_ref[...] = jnp.dot(h2, wf_ref[...], preferred_element_type=jnp.float32) + bf_ref[...]


# ----------------------------------------------------------------------------
# Parameter packing (plain-JAX glue, runs once outside the kernel)
# ----------------------------------------------------------------------------
def _pack_params(conv1_w, conv1_b, conv2_w, conv2_b, fc_w, fc_b):
    """Pack PyTorch-shaped weights into kernel-friendly matmul matrices.

    conv1_w (8,1,3,3), conv1_b (8,), conv2_w (4,8,3,3), conv2_b (4,),
    fc_w (10,4), fc_b (10,).
    """
    w1 = jnp.asarray(conv1_w, jnp.float32).reshape(8, 3, 3)

    # Expanded conv1 matrix: h1[n, C] = sum_col x_flat[n, col] * W1e[col, C]
    #   C   = (ri*2 + rj)*128 + c*9 + (pi*3 + pj)    (window-pos slab, channel, pooled pos)
    #   col = (i + di)*8 + (j + dj)   with (i, j) = (2*pi + ri, 2*pj + rj)
    rows, cols, src = [], [], []
    for ri in range(2):
        for rj in range(2):
            for c in range(8):
                for pi in range(3):
                    for pj in range(3):
                        c_out = (ri * 2 + rj) * SLAB + c * 9 + pi * 3 + pj
                        i, j = 2 * pi + ri, 2 * pj + rj
                        for di in range(3):
                            for dj in range(3):
                                rows.append((i + di) * 8 + (j + dj))
                                cols.append(c_out)
                                src.append(c * 9 + di * 3 + dj)
    rows = np.asarray(rows)
    cols = np.asarray(cols)
    src = np.asarray(src)

    w1e = jnp.zeros((64, C1_COLS), jnp.float32).at[rows, cols].set(w1.reshape(72)[src])

    t = np.arange(C1_COLS) % SLAB
    c_of_col = np.where(t < 72, t // 9, 0)
    valid = jnp.asarray((t < 72).astype(np.float32))
    b1e = (jnp.asarray(conv1_b, jnp.float32)[c_of_col] * valid).reshape(1, C1_COLS)

    # conv2: rows indexed by (channel, pooled_pos); padded rows stay zero.
    w2e = jnp.zeros((SLAB, 4), jnp.float32)
    w2e = w2e.at[0:72, :].set(jnp.asarray(conv2_w, jnp.float32).reshape(4, 72).T)
    b2e = jnp.asarray(conv2_b, jnp.float32).reshape(1, 4)

    wfe = jnp.asarray(fc_w, jnp.float32).T                # (4, 10)
    bfe = jnp.asarray(fc_b, jnp.float32).reshape(1, 10)
    return w1e, b1e, w2e, b2e, wfe, bfe


# ----------------------------------------------------------------------------
# Wrapper
# ----------------------------------------------------------------------------
def digits_convnet_forward(x, conv1_w, conv1_b, conv2_w, conv2_b, fc_w, fc_b,
                           *, max_tile_n=1024):
    """x: (N, 8, 8) f32, PyTorch-shaped weights. Returns (N, 10) f32."""
    n = x.shape[0]
    w1e, b1e, w2e, b2e, wfe, bfe = _pack_params(
        conv1_w, conv1_b, conv2_w, conv2_b, fc_w, fc_b)

    # Batch tile: multiple of 8 (sublane width); capped so double-buffered
    # blocks + the (T, 512) intermediate stay tiny even under v7x's 64 MiB VMEM.
    n8 = ((n + 7) // 8) * 8
    if n8 <= max_tile_n:
        tile_n, n_pad = n8, n8
    else:
        tile_n = max_tile_n
        n_pad = ((n + tile_n - 1) // tile_n) * tile_n

    # Batch-major input: (N_pad, 64).  reshape of a contiguous (N,8,8) is free;
    # no transpose pass over the input (unlike the feature-major variant).
    x_bm = x.reshape(n, 64).astype(jnp.float32)
    if n_pad != n:
        x_bm = jnp.pad(x_bm, ((0, n_pad - n), (0, 0)))

    const2 = lambda shape: pl.BlockSpec(shape, lambda i: (0, 0))
    out_bm = pl.pallas_call(
        digits_convnet_kernel,
        grid=(n_pad // tile_n,),
        in_specs=[
            pl.BlockSpec((tile_n, 64), lambda i: (i, 0)),   # activations: tiled
            const2((64, C1_COLS)), const2((1, C1_COLS)),    # weights: VMEM-resident
            const2((SLAB, 4)), const2((1, 4)),
            const2((4, 10)), const2((1, 10)),
        ],
        out_specs=pl.BlockSpec((tile_n, 10), lambda i: (i, 0)),
        out_shape=jax.ShapeDtypeStruct((n_pad, 10), jnp.float32),
        compiler_params=pltpu.CompilerParams(
            dimension_semantics=("parallel",)),              # megacore on v7x
    )(x_bm, w1e, b1e, w2e, b2e, wfe, bfe)

    return out_bm[:n] if n_pad != n else out_bm              # (N, 10)


# ----------------------------------------------------------------------------
# Pure-JAX reference (independent of the kernel's weight-packing trick)
# ----------------------------------------------------------------------------
def reference_forward(x, conv1_w, conv1_b, conv2_w, conv2_b, fc_w, fc_b):
    xb = x[:, None, :, :]                                                # NCHW
    dn = ("NCHW", "OIHW", "NCHW")
    h1 = jax.lax.conv_general_dilated(xb, conv1_w, (1, 1), "VALID",
                                      dimension_numbers=dn) + conv1_b.reshape(1, 8, 1, 1)
    h1 = jnp.maximum(h1, 0.0)
    p = jax.lax.reduce_window(h1, -jnp.inf, jax.lax.max,
                              (1, 1, 2, 2), (1, 1, 2, 2), "VALID")
    p = jnp.maximum(p, 0.0)
    h2 = jax.lax.conv_general_dilated(p, conv2_w, (1, 1), "VALID",
                                      dimension_numbers=dn) + conv2_b.reshape(1, 4, 1, 1)
    h2 = jnp.maximum(h2, 0.0).reshape(-1, 4)
    return h2 @ fc_w.T + fc_b


if __name__ == "__main__":
    key = jax.random.PRNGKey(0)
    kx, k1, k2, k3, k4, k5, k6, kx2 = jax.random.split(key, 8)

    # Deterministic synthetic parameter init (PyTorch-style uniform bounds).
    def unif(k, shape, fan_in):
        bound = 1.0 / np.sqrt(np.float32(fan_in))
        return jax.random.uniform(k, shape, jnp.float32, -bound, bound)

    conv1_w = unif(k1, (8, 1, 3, 3), 1 * 9)
    conv1_b = unif(k2, (8,), 1 * 9)
    conv2_w = unif(k3, (4, 8, 3, 3), 8 * 9)
    conv2_b = unif(k4, (4,), 8 * 9)
    fc_w = unif(k5, (10, 4), 4)
    fc_b = unif(k6, (10,), 4)

    # Small batch (single tile, padded to a sublane multiple).
    N = 4
    x = jax.random.normal(kx, (N, 8, 8), dtype=jnp.float32)
    out = digits_convnet_forward(x, conv1_w, conv1_b, conv2_w, conv2_b, fc_w, fc_b)
    out = jax.block_until_ready(out)
    ref = reference_forward(x, conv1_w, conv1_b, conv2_w, conv2_b, fc_w, fc_b)
    assert out.shape == (N, 10)
    assert jnp.allclose(out, ref, atol=1e-4, rtol=1e-4), (out, ref)

    # Larger batch: exercises batch tiling (grid > 1) and tail padding.
    N2 = 1337
    x2 = jax.random.normal(kx2, (N2, 8, 8), dtype=jnp.float32)
    out2 = digits_convnet_forward(x2, conv1_w, conv1_b, conv2_w, conv2_b, fc_w, fc_b)
    out2 = jax.block_until_ready(out2)
    ref2 = reference_forward(x2, conv1_w, conv1_b, conv2_w, conv2_b, fc_w, fc_b)
    assert out2.shape == (N2, 10)
    assert jnp.allclose(out2, ref2, atol=1e-4, rtol=1e-4)

    print("KERNEL_OK")
</pallas_src>

<mosaic_0001>
module attributes {stable_mosaic.version = 11 : i64} {
  func.func @digits_convnet_kernel(%arg0: i32, %arg1: memref<8x64xf32, #tpu.memory_space<vmem>>, %arg2: memref<64x512xf32, #tpu.memory_space<vmem>>, %arg3: memref<1x512xf32, #tpu.memory_space<vmem>>, %arg4: memref<128x4xf32, #tpu.memory_space<vmem>>, %arg5: memref<1x4xf32, #tpu.memory_space<vmem>>, %arg6: memref<4x10xf32, #tpu.memory_space<vmem>>, %arg7: memref<1x10xf32, #tpu.memory_space<vmem>>, %arg8: memref<8x10xf32, #tpu.memory_space<vmem>>) attributes {dimension_semantics = [#tpu.dimension_semantics<parallel>], iteration_bounds = array<i64: 1>, scalar_prefetch = 0 : i64, scratch_operands = 0 : i64, tpu.core_type = #tpu.core_type<tc>, window_params = [{transform_indices = @transform_0, window_bounds = array<i64: 8, 64>}, {pipeline_mode = #tpu.pipeline_mode<synchronous>, transform_indices = @transform_1, window_bounds = array<i64: 64, 512>}, {pipeline_mode = #tpu.pipeline_mode<synchronous>, transform_indices = @transform_2, window_bounds = array<i64: 1, 512>}, {pipeline_mode = #tpu.pipeline_mode<synchronous>, transform_indices = @transform_3, window_bounds = array<i64: 128, 4>}, {pipeline_mode = #tpu.pipeline_mode<synchronous>, transform_indices = @transform_4, window_bounds = array<i64: 1, 4>}, {pipeline_mode = #tpu.pipeline_mode<synchronous>, transform_indices = @transform_5, window_bounds = array<i64: 4, 10>}, {pipeline_mode = #tpu.pipeline_mode<synchronous>, transform_indices = @transform_6, window_bounds = array<i64: 1, 10>}, {transform_indices = @transform_7, window_bounds = array<i64: 8, 10>}]} {
    %c0 = arith.constant 0 : index
    %c0_0 = arith.constant 0 : index
    %0 = vector.load %arg1[%c0, %c0_0] : memref<8x64xf32, #tpu.memory_space<vmem>>, vector<8x64xf32>
    %c0_1 = arith.constant 0 : index
    %c0_2 = arith.constant 0 : index
    %1 = vector.load %arg2[%c0_1, %c0_2] : memref<64x512xf32, #tpu.memory_space<vmem>>, vector<64x512xf32>
    %cst = arith.constant dense<0.000000e+00> : vector<8x512xf32>
    %2 = tpu.matmul %0, %1, %cst {dimension_numbers = #tpu.dot_dimension_numbers<[1], [0], [0], [1], [0, 0, 1, 1], [], []>} : vector<8x64xf32>, vector<64x512xf32>, vector<8x512xf32> -> vector<8x512xf32>
    %c0_3 = arith.constant 0 : index
    %c0_4 = arith.constant 0 : index
    %3 = vector.load %arg3[%c0_3, %c0_4] : memref<1x512xf32, #tpu.memory_space<vmem>>, vector<1x512xf32>
    %4 = vector.broadcast %3 : vector<1x512xf32> to vector<8x512xf32>
    %5 = arith.addf %2, %4 : vector<8x512xf32>
    %cst_5 = arith.constant 0.000000e+00 : f32
    %6 = vector.broadcast %cst_5 : f32 to vector<8x512xf32>
    %7 = arith.maximumf %5, %6 : vector<8x512xf32>
    %8 = vector.extract_strided_slice %7 {offsets = [0, 0], sizes = [8, 128], strides = [1, 1]} : vector<8x512xf32> to vector<8x128xf32>
    %9 = vector.extract_strided_slice %7 {offsets = [0, 128], sizes = [8, 128], strides = [1, 1]} : vector<8x512xf32> to vector<8x128xf32>
    %10 = arith.maximumf %8, %9 : vector<8x128xf32>
    %11 = vector.extract_strided_slice %7 {offsets = [0, 256], sizes = [8, 128], strides = [1, 1]} : vector<8x512xf32> to vector<8x128xf32>
    %12 = vector.extract_strided_slice %7 {offsets = [0, 384], sizes = [8, 128], strides = [1, 1]} : vector<8x512xf32> to vector<8x128xf32>
    %13 = arith.maximumf %11, %12 : vector<8x128xf32>
    %14 = arith.maximumf %10, %13 : vector<8x128xf32>
    %c0_6 = arith.constant 0 : index
    %c0_7 = arith.constant 0 : index
    %15 = vector.load %arg4[%c0_6, %c0_7] : memref<128x4xf32, #tpu.memory_space<vmem>>, vector<128x4xf32>
    %cst_8 = arith.constant dense<0.000000e+00> : vector<8x4xf32>
    %16 = tpu.matmul %14, %15, %cst_8 {dimension_numbers = #tpu.dot_dimension_numbers<[1], [0], [0], [1], [0, 0, 1, 1], [], []>} : vector<8x128xf32>, vector<128x4xf32>, vector<8x4xf32> -> vector<8x4xf32>
    %c0_9 = arith.constant 0 : index
    %c0_10 = arith.constant 0 : index
    %17 = vector.load %arg5[%c0_9, %c0_10] : memref<1x4xf32, #tpu.memory_space<vmem>>, vector<1x4xf32>
    %18 = vector.broadcast %17 : vector<1x4xf32> to vector<8x4xf32>
    %19 = arith.addf %16, %18 : vector<8x4xf32>
    %cst_11 = arith.constant 0.000000e+00 : f32
    %20 = vector.broadcast %cst_11 : f32 to vector<8x4xf32>
    %21 = arith.maximumf %19, %20 : vector<8x4xf32>
    %c0_12 = arith.constant 0 : index
    %c0_13 = arith.constant 0 : index
    %22 = vector.load %arg6[%c0_12, %c0_13] : memref<4x10xf32, #tpu.memory_space<vmem>>, vector<4x10xf32>
    %cst_14 = arith.constant dense<0.000000e+00> : vector<8x10xf32>
    %23 = tpu.matmul %21, %22, %cst_14 {dimension_numbers = #tpu.dot_dimension_numbers<[1], [0], [0], [1], [0, 0, 1, 1], [], []>} : vector<8x4xf32>, vector<4x10xf32>, vector<8x10xf32> -> vector<8x10xf32>
    %c0_15 = arith.constant 0 : index
    %c0_16 = arith.constant 0 : index
    %24 = vector.load %arg7[%c0_15, %c0_16] : memref<1x10xf32, #tpu.memory_space<vmem>>, vector<1x10xf32>
    %25 = vector.broadcast %24 : vector<1x10xf32> to vector<8x10xf32>
    %26 = arith.addf %23, %25 : vector<8x10xf32>
    %c0_17 = arith.constant 0 : index
    %c0_18 = arith.constant 0 : index
    %27 = vector.load %arg8[%c0_17, %c0_18] : memref<8x10xf32, #tpu.memory_space<vmem>>, vector<8x10xf32>
    tpu.vector_store %arg8[%c0_17, %c0_18], %26 {strides = array<i32>} : memref<8x10xf32, #tpu.memory_space<vmem>>, vector<8x10xf32>,
    return
  }
  func.func @transform_0(%arg0: i32) -> (i32, i32) {
    %c0_i32 = arith.constant 0 : i32
    %c0_i32_0 = arith.constant 0 : i32
    return %arg0, %c0_i32 : i32, i32
  }
  func.func @transform_1(%arg0: i32) -> (i32, i32) {
    %c0_i32 = arith.constant 0 : i32
    %c0_i32_0 = arith.constant 0 : i32
    %c0_i32_1 = arith.constant 0 : i32
    return %c0_i32, %c0_i32_0 : i32, i32
  }
  func.func @transform_2(%arg0: i32) -> (i32, i32) {
    %c0_i32 = arith.constant 0 : i32
    %c0_i32_0 = arith.constant 0 : i32
    %c0_i32_1 = arith.constant 0 : i32
    return %c0_i32, %c0_i32_0 : i32, i32
  }
  func.func @transform_3(%arg0: i32) -> (i32, i32) {
    %c0_i32 = arith.constant 0 : i32
    %c0_i32_0 = arith.constant 0 : i32
    %c0_i32_1 = arith.constant 0 : i32
    return %c0_i32, %c0_i32_0 : i32, i32
  }
  func.func @transform_4(%arg0: i32) -> (i32, i32) {
    %c0_i32 = arith.constant 0 : i32
    %c0_i32_0 = arith.constant 0 : i32
    %c0_i32_1 = arith.constant 0 : i32
    return %c0_i32, %c0_i32_0 : i32, i32
  }
  func.func @transform_5(%arg0: i32) -> (i32, i32) {
    %c0_i32 = arith.constant 0 : i32
    %c0_i32_0 = arith.constant 0 : i32
    %c0_i32_1 = arith.constant 0 : i32
    return %c0_i32, %c0_i32_0 : i32, i32
  }
  func.func @transform_6(%arg0: i32) -> (i32, i32) {
    %c0_i32 = arith.constant 0 : i32
    %c0_i32_0 = arith.constant 0 : i32
    %c0_i32_1 = arith.constant 0 : i32
    return %c0_i32, %c0_i32_0 : i32, i32
  }
  func.func @transform_7(%arg0: i32) -> (i32, i32) {
    %c0_i32 = arith.constant 0 : i32
    %c0_i32_0 = arith.constant 0 : i32
    return %arg0, %c0_i32 : i32, i32
  }
}

</mosaic_0001>

<bundles_post_ra>
// kernel: tpu_custom_call.1
= control target key start
LH: loop header
LB: loop body
LE: loop exit
PB: predicated region body
PF: predicated region fallthrough
CT: control target
= control target key end

     0   :  { %12 = vsyncpa [#allocation3], 0  ;;  %s451_s0 = inlined_call_operand.vmem [shape: f32[8,64], index: 0, kind: input, shape index: {}]   ;;  %s452_s1 = inlined_call_operand.hbm [shape: f32[64,512], index: 1, kind: input, shape index: {}]   ;;  %s453_s2 = inlined_call_operand.vmem [shape: f32[1,512], index: 2, kind: input, shape index: {}]   ;;  %s454_s3 = inlined_call_operand.vmem [shape: f32[128,4], index: 3, kind: input, shape index: {}]   ;;  %s455_s4 = inlined_call_operand.vmem [shape: f32[1,4], index: 4, kind: input, shape index: {}]   ;;  %s456_s5 = inlined_call_operand.vmem [shape: f32[4,10], index: 5, kind: input, shape index: {}]   ;;  %s457_s6 = inlined_call_operand.vmem [shape: f32[1,10], index: 6, kind: input, shape index: {}]   ;;  %s458_s7 = inlined_call_operand.hbm [shape: f32[8,10], index: 7, kind: output, shape index: {}]  }
   0x1   :  { %13 = vsyncpa [#allocation4], 0  ;;  %s20_s26 = sshll.u32 %s452_s1, 4  ;;  %s334_s27 = smov [#allocation2]   ;;  %s21_s26 = int_to_ptr.hbm [resolvable:$true] %s20_s26 }
   0x2   :  { %s22_s28 = sshll.u32 %s334_s27, 4  ;;  %s335_s29 = smov 512   ;;  %s23_s28 = int_to_ptr.vmem [resolvable:$true] %s22_s28 }
   0x3   :  { %s336_s30 = smov 32  }
   0x4   :  { %28 = dma.hbm_to_vmem [thread:$0]  %s21_s26, 4096, %s23_s28, [#allocation3], %s335_s29, %s335_s29, %s336_s30  }
   0x5   :  { %330 = dma.done.wait [#allocation3], 4096  }
   0x6   :  { %331 = vsyncadd [#allocation3], 4294963200  ;;  %v72_v0 = vld [vmem:[#allocation2 + $0xe0] sm:$0xff]  ;;  %v73_v3 = vld [vmem:[#allocation2 + $0xe8] sm:$0xff]  ;;  %vm86_vm0 = vcmask 523264   ;;  %vm227_vm1 = vcmask 1043456  }
   0x7   :  { %v68_v1 = vld [vmem:[#allocation2 + $0xc0] sm:$0xff]  ;;  %98 = vmatpush.msra.mxu2 %v72_v0  ;;  %118 = vmatpush.msra.mxu1 %v73_v3  ;;  %v69_v4 = vld [vmem:[#allocation2 + $0xc8] sm:$0xff]  ;;  %v75_v5 = vld [vmem:[#allocation2 + $0xf8] sm:$0xff]  ;;  %vm223_vm2 = vcmask 31744   ;;  %s337_s20 = smov [#allocation5]   ;;  %s260_s24 = sshll.u32 %s458_s7, 4  ;;  %s261_s24 = int_to_ptr.hbm [resolvable:$true] %s260_s24 }
   0x8   :  { %v64_v2 = vld [vmem:[#allocation2 + $0xa0] sm:$0xff]  ;;  %158 = vmatpush.msra.mxu3 %v75_v5  ;;  %v65_v7 = vld [vmem:[#allocation2 + $0xa8] sm:$0xff]  ;;  %v71_v8 = vld [vmem:[#allocation2 + $0xd8] sm:$0xff]  ;;  %s258_s21 = sshll.u32 %s337_s20, 4  ;;  %vm251_vm3 = vcmask 80896   ;;  %s259_s21 = int_to_ptr.vmem [resolvable:$true] %s258_s21 }
   0x9   :  { %99 = vmatpush.msra.mxu2 %v68_v1  ;;  %v60_v6 = vld [vmem:[#allocation2 + $0x80] sm:$0xff]  ;;  %119 = vmatpush.msra.mxu1 %v69_v4  ;;  %v67_v9 = vld [vmem:[#allocation2 + $0xb8] sm:$0xff]  ;;  %v61_v11 = vld [vmem:[#allocation2 + $0x88] sm:$0xff] }
   0xa   :  { %v56_v10 = vld [vmem:[#allocation2 + $0x60] sm:$0xff]  ;;  %159 = vmatpush.msra.mxu3 %v71_v8  ;;  %v63_v12 = vld [vmem:[#allocation2 + $0x98] sm:$0xff]  ;;  %v57_v14 = vld [vmem:[#allocation2 + $0x68] sm:$0xff] }
   0xb   :  { %100 = vmatpush.msra.mxu2 %v64_v2  ;;  %120 = vmatpush.msra.mxu1 %v65_v7  ;;  %v52_v13 = vld [vmem:[#allocation2 + $0x40] sm:$0xff]  ;;  %v59_v15 = vld [vmem:[#allocation2 + $0x78] sm:$0xff]  ;;  %v53_v17 = vld [vmem:[#allocation2 + $0x48] sm:$0xff] }
   0xc   :  { %160 = vmatpush.msra.mxu3 %v67_v9  ;;  %v48_v16 = vld [vmem:[#allocation2 + $0x20] sm:$0xff]  ;;  %v55_v18 = vld [vmem:[#allocation2 + $0x58] sm:$0xff]  ;;  %v191_v20 = vld [vmem:[%s454_s3 + $0x70] sm:$0xff] }
   0xd   :  { %101 = vmatpush.msra.mxu2 %v60_v6  ;;  %121 = vmatpush.msra.mxu1 %v61_v11  ;;  %v192_v19 = vld [vmem:[%s454_s3 + $0x78] sm:$0xff]  ;;  %v44_v21 = vld [vmem:[#allocation2] sm:$0xff]  ;;  %v49_v22 = vld [vmem:[#allocation2 + $0x28] sm:$0xff] }
   0xe   :  { %161 = vmatpush.msra.mxu3 %v63_v12  ;;  %197 = vmatpush.msra.mxu0 %v192_v19  ;;  %v74_v23 = vld [vmem:[#allocation2 + $0xf0] sm:$0xff]  ;;  %v51_v24 = vld [vmem:[#allocation2 + $0x38] sm:$0xff]  ;;  %v43_v25 = vld [vmem:[%s451_s0] sm:$0xff] }
   0xf   :  { %102 = vmatpush.msra.mxu2 %v56_v10  ;;  %122 = vmatpush.msra.mxu1 %v57_v14  ;;  %v45_v26 = vld [vmem:[#allocation2 + $0x8] sm:$0xff]  ;;  %v70_v27 = vld [vmem:[#allocation2 + $0xd0] sm:$0xff]  ;;  %v47_v28 = vld [vmem:[#allocation2 + $0x18] sm:$0xff] }
  0x10   :  { %162 = vmatpush.msra.mxu3 %v59_v15  ;;  %198 = vmatpush.msra.mxu0 %v191_v20  ;;  %v190_v29 = vld [vmem:[%s454_s3 + $0x68] sm:$0xff]  ;;  %v66_v30 = vld [vmem:[#allocation2 + $0xb0] sm:$0xff]  ;;  %v189_v31 = vld [vmem:[%s454_s3 + $0x60] sm:$0xff] }
  0x11   :  { %103 = vmatpush.msra.mxu2 %v52_v13  ;;  %123 = vmatpush.msra.mxu1 %v53_v17  ;;  %v62_v32 = vld [vmem:[#allocation2 + $0x90] sm:$0xff]  ;;  %v188_v33 = vld [vmem:[%s454_s3 + $0x58] sm:$0xff]  ;;  %v186_v37 = vld [vmem:[%s454_s3 + $0x48] sm:$0xff] }
  0x12   :  { %163 = vmatpush.msra.mxu3 %v55_v18  ;;  %199 = vmatpush.msra.mxu0 %v190_v29  ;;  %v58_v34 = vld [vmem:[#allocation2 + $0x70] sm:$0xff]  ;;  %v185_v40 = vld [vmem:[%s454_s3 + $0x40] sm:$0xff]  ;;  %v184_v41 = vld [vmem:[%s454_s3 + $0x38] sm:$0xff] }
  0x13   :  { %104 = vmatpush.msra.mxu2 %v48_v16  ;;  %124 = vmatpush.msra.mxu1 %v49_v22  ;;  %v187_v35 = vld [vmem:[%s454_s3 + $0x50] sm:$0xff]  ;;  %v182_v43 = vld [vmem:[%s454_s3 + $0x28] sm:$0xff]  ;;  %v181_v44 = vld [vmem:[%s454_s3 + $0x20] sm:$0xff] }
  0x14   :  { %164 = vmatpush.msra.mxu3 %v51_v24  ;;  %200 = vmatpush.msra.mxu0 %v189_v31  ;;  %v54_v36 = vld [vmem:[#allocation2 + $0x50] sm:$0xff]  ;;  %v180_v45 = vld [vmem:[%s454_s3 + $0x18] sm:$0xff]  ;;  %v178_v47 = vld [vmem:[%s454_s3 + $0x8] sm:$0xff] }
  0x15   :  { %105 = vmatpush.msra.mxu2 %v44_v21  ;;  %125 = vmatpush.msra.mxu1 %v45_v26  ;;  %v50_v38 = vld [vmem:[#allocation2 + $0x30] sm:$0xff]  ;;  %v177_v48 = vld [vmem:[%s454_s3] sm:$0xff] }
  0x16   :  { %270 = vmatmul.msk.f32.vlgmr.msra.gmra.mxu2 %vm86_vm0, %v43_v25  ;;  %271 = vmatmul.msk.f32.vlgmr.msra.gmra.mxu1 %vm86_vm0, %v43_v25  ;;  %v46_v39 = vld [vmem:[#allocation2 + $0x10] sm:$0xff]  ;;  %v218_v49 = vld [vmem:[%s456_s5] sm:$0xf] }
  0x17   :  { %138 = vmatpush.msrb.mxu2 %v74_v23  ;;  %165 = vmatpush.msra.mxu3 %v47_v28  ;;  %v183_v42 = vld [vmem:[%s454_s3 + $0x30] sm:$0xff]  ;;  %v76_v50 = vld [vmem:[%s453_s2] sm:$0xf] }
  0x18   :  { %273 = vmatmul.msk.f32.vlgmr.msra.gmra.mxu3 %vm86_vm0, %v43_v25  ;;  %201 = vmatpush.msra.mxu0 %v188_v33  ;;  %v179_v46 = vld [vmem:[%s454_s3 + $0x10] sm:$0xff]  ;;  %v78_v52 = vperm.slane %v76_v50, 0  ;;  %v79_v53 = vperm.slane %v76_v50, 1  ;;  %v81_v54 = vperm.slane %v76_v50, 3  ;;  %v80_v59 = vperm.slane %v76_v50, 2 }
  0x19   :  { %139 = vmatpush.msrb.mxu2 %v70_v27  ;;  %274 = vmatpush.msk.msrb.mxu1 %vm227_vm1, %v218_v49  ;;  %v280_v6 = vld [vmem:[%s455_s4] ss:$0 sm:$0xff] }
  0x1a   :  { %202 = vmatpush.msra.mxu0 %v187_v35  ;;  %v281_v10 = vld [vmem:[%s457_s6] ss:$0 sm:$0xff] }
  0x1b   :  { %140 = vmatpush.msrb.mxu2 %v66_v30 }
  0x1c   :  { %203 = vmatpush.msra.mxu0 %v186_v37 }
  0x1d   :  { %141 = vmatpush.msrb.mxu2 %v62_v32 }
  0x1e   :  { %204 = vmatpush.msra.mxu0 %v185_v40 }
  0x1f   :  { %142 = vmatpush.msrb.mxu2 %v58_v34 }
  0x20   :  { %205 = vmatpush.msra.mxu0 %v184_v41 }
  0x21   :  { %143 = vmatpush.msrb.mxu2 %v54_v36 }
  0x22   :  { %206 = vmatpush.msra.mxu0 %v183_v42 }
  0x23   :  { %144 = vmatpush.msrb.mxu2 %v50_v38 }
  0x24   :  { %207 = vmatpush.msra.mxu0 %v182_v43 }
  0x25   :  { %145 = vmatpush.msrb.mxu2 %v46_v39 }
  0x26   :  { %272 = vmatmul.msk.f32.vlgmr.msrb.gmra.mxu2 %vm86_vm0, %v43_v25  ;;  %208 = vmatpush.msra.mxu0 %v181_v44 }
  0x28   :  { %209 = vmatpush.msra.mxu0 %v180_v45 }
  0x2a   :  { %210 = vmatpush.msra.mxu0 %v179_v46 }
  0x2c   :  { %211 = vmatpush.msra.mxu0 %v178_v47 }
  0x2e   :  { %212 = vmatpush.msra.mxu0 %v177_v48 }
  0x93   :  { %v127_v55 = vpop.f32.mrf.mxu1 }
  0x94   :  { %v128_v58 = vadd.f32 %v127_v55, %v79_v53 }
  0x96   :  { %v171_v63 = vmax.f32 %v128_v58, 0.0 }
  0x99   :  { %v107_v51 = vpop.f32.mrf.mxu2 }
  0x9a   :  { %v108_v57 = vadd.f32 %v107_v51, %v78_v52 }
  0x9b   :  { %v167_v56 = vpop.f32.mrf.mxu3 }
  0x9c   :  { %v168_v60 = vadd.f32 %v167_v56, %v81_v54  ;;  %v170_v62 = vmax.f32 %v108_v57, 0.0 }
  0x9e   :  { %v173_v1 = vmax.f32 %v168_v60, 0.0  ;;  %v174_v3 = vmax.f32 %v170_v62, %v171_v63 }
  0xa9   :  { %v147_v61 = vpop.f32.mrf.mxu2 }
  0xaa   :  { %v148_v0 = vadd.f32 %v147_v61, %v80_v59 }
  0xac   :  { %v172_v2 = vmax.f32 %v148_v0, 0.0 }
  0xae   :  { %v175_v4 = vmax.f32 %v172_v2, %v173_v1 }
  0xb0   :  { %v176_v5 = vmax.f32 %v174_v3, %v175_v4 }
  0xb2   :  { %213 = vmatmul.f32.vlgmr.msra.gmra.mxu0 %v176_v5 }
 0x12f   :  { %v214_v7 = vpop.f32.mrf.mxu0 }
 0x130   :  { %v215_v8 = vadd.f32 %v280_v6, %v214_v7 }
 0x132   :  { %v217_v9 = vmax.f32 %v215_v8, 0.0 }
 0x134   :  { %275 = vmatmul.msk.f32.vlgmr.msrb.gmra.mxu1 %vm223_vm2, %v217_v9 }
 0x1b1   :  { %v248_v11 = vpop.f32.mrf.mxu1 }
 0x1b2   :  { %v249_v12 = vadd.f32 %v281_v10, %v248_v11 }
 0x1b4   :  { %252 = vst.msk [vmem:[#allocation5] sm:$0xff] %vm251_vm3, %v249_v12 }
 0x1b5   :  { %263 = dma.vmem_to_hbm [thread:$0]  %s259_s21, 128, %s261_s24, [#allocation4]  }
 0x1b6   :  { %332 = dma.done.wait [#allocation4], 128  }
 0x1b7   :  { %333 = vsyncadd [#allocation4], 4294967168 }
 0x1b8   :  { %268 = vsyncpa [#allocation3], 1 }
 0x1b9   :  { %269 = vsyncpa [#allocation4], 1 }

</bundles_post_ra>
